<compile_context>
chip_gen: v6e
topology: v6e:2x2x1
jax: 0.10.0
libtpu: 0.0.40
codegen_flags: <defaults>
</compile_context>

<pallas_src>
import jax
import jax.numpy as jnp
from jax.experimental import pallas as pl
from jax.experimental.pallas import tpu as pltpu

_MASK_BIAS = -1e30                       # finite "-inf": no NaN propagation
_TILE_BUDGET_BYTES = 4 * 1024 * 1024     # hidden-state bytes per grid step
_VMEM_LIMIT_BYTES = 48 * 1024 * 1024     # > v5e 16 MiB default, < v7x 64 MiB phys
_MAX_ROWS_PER_STEP = 8                   # cap on batch rows folded into one step


def _attn_pool_body(h_ref, ctx_ref, bias_ref, o_ref, m_ref, l_ref, acc_ref):
    # h_ref:    (TB, tT, D)  hidden-state tile, native dtype (f32 / bf16)
    # ctx_ref:  (1, 1, D)    context vector, f32
    # bias_ref: (TB, tT, 1)  additive mask bias (0 / -1e30), f32   (or None)
    # o_ref:    (TB, 1, D)   pooled output tile (native dtype)
    # m_ref:    (TB, 1, 1)   running max          (f32 scratch)
    # l_ref:    (TB, 1, 1)   running denominator  (f32 scratch)
    # acc_ref:  (TB, 1, D)   running weighted sum (f32 scratch)
    t = pl.program_id(1)

    @pl.when(t == 0)
    def _init():
        m_ref[...] = jnp.full_like(m_ref, -jnp.inf)
        l_ref[...] = jnp.zeros_like(l_ref)
        acc_ref[...] = jnp.zeros_like(acc_ref)

    h = h_ref[...]                                     # (TB, tT, D) native
    ctx = ctx_ref[...]                                 # (1, 1, D)  f32

    # Scores in f32, tokens on the sublane axis: VPU multiply + lane reduction.
    s = jnp.sum(h * ctx, axis=-1, keepdims=True)       # (TB, tT, 1) f32
    if bias_ref is not None:
        s = s + bias_ref[...]                          # additive mask bias

    # Online softmax, batched over all TB rows of the tile (no per-row loop).
    m_prev = m_ref[...]                                              # (TB, 1, 1)
    m_new = jnp.maximum(m_prev, jnp.max(s, axis=-2, keepdims=True))  # (TB, 1, 1)
    alpha = jnp.exp(m_prev - m_new)                                  # (TB, 1, 1)
    p = jnp.exp(s - m_new)                                           # (TB, tT, 1)
    l_ref[...] = alpha * l_ref[...] + jnp.sum(p, axis=-2, keepdims=True)

    # Pooled accumulation on the VPU: lane-broadcast multiply + sublane sum
    # (keeps the hidden tile off the MXU weight path entirely).
    acc_ref[...] = alpha * acc_ref[...] + jnp.sum(p * h, axis=-2, keepdims=True)
    m_ref[...] = m_new

    @pl.when(t == pl.num_programs(1) - 1)
    def _finalize():
        l = l_ref[...]
        inv_l = pl.reciprocal(l, approx=True)          # EUP vrcp
        inv_l = inv_l * (2.0 - l * inv_l)              # one Newton step -> ~exact
        o_ref[...] = (acc_ref[...] * inv_l).astype(o_ref.dtype)


def _kernel_masked(h_ref, ctx_ref, bias_ref, o_ref, m_ref, l_ref, acc_ref):
    _attn_pool_body(h_ref, ctx_ref, bias_ref, o_ref, m_ref, l_ref, acc_ref)


def _kernel_unmasked(h_ref, ctx_ref, o_ref, m_ref, l_ref, acc_ref):
    _attn_pool_body(h_ref, ctx_ref, None, o_ref, m_ref, l_ref, acc_ref)


def _largest_divisor(n, cap, align=1):
    """Largest divisor of n that is <= cap and a multiple of align (0 if none)."""
    cap = min(n, cap)
    best = 0
    d = align
    while d <= cap:
        if n % d == 0:
            best = d
        d += align
    return best


def _plan(B, T, D, itemsize):
    """Pick (TB, tT, T_pad) for the (batch, token) tiling."""
    row_bytes = T * D * itemsize
    if row_bytes <= _TILE_BUDGET_BYTES:
        # Whole rows fit: fold a few batch rows into one grid step.
        cap_b = min(_MAX_ROWS_PER_STEP, _TILE_BUDGET_BYTES // max(row_bytes, 1))
        if B > 1:
            cap_b = min(cap_b, B // 2)   # keep >=2 parallel steps (v7x megacore)
        TB = max(1, _largest_divisor(B, max(cap_b, 1)))
        return TB, T, T
    # Long rows: tile the token axis; online softmax handles the reduction.
    cap_t = max(8, (_TILE_BUDGET_BYTES // (D * itemsize)) // 8 * 8)
    tT = _largest_divisor(T, cap_t, align=8)
    if tT >= 8:
        return 1, tT, T
    # No usable multiple-of-8 divisor: pad T (padded tokens get -1e30 bias).
    tT = cap_t
    T_pad = ((T + tT - 1) // tT) * tT
    return 1, tT, T_pad


def attention_pool(hidden_states, context_vector, mask=None):
    """
    hidden_states: (B, T, D); context_vector: (D,)
    mask: optional (B, T); nonzero = valid token, 0 = padding
    returns: (B, D), same dtype as hidden_states
    """
    B, T, D = hidden_states.shape
    dtype = hidden_states.dtype
    itemsize = jnp.dtype(dtype).itemsize

    TB, tT, T_pad = _plan(B, T, D, itemsize)
    use_bias = (mask is not None) or (T_pad != T)

    if T_pad != T:
        hidden_states = jnp.pad(hidden_states, ((0, 0), (0, T_pad - T), (0, 0)))

    ctx = context_vector.reshape(1, 1, D).astype(jnp.float32)

    operands = [hidden_states, ctx]
    in_specs = [
        pl.BlockSpec((TB, tT, D), lambda b, t: (b, t, 0)),     # hidden states
        pl.BlockSpec((1, 1, D), lambda b, t: (0, 0, 0)),       # context vector
    ]
    if use_bias:
        if mask is None:
            bias = jnp.zeros((B, T, 1), jnp.float32)
        else:
            bias = jnp.where((mask == 0).reshape(B, T, 1),
                             jnp.float32(_MASK_BIAS), jnp.float32(0.0))
        if T_pad != T:
            bias = jnp.pad(bias, ((0, 0), (0, T_pad - T), (0, 0)),
                           constant_values=_MASK_BIAS)
        operands.append(bias)
        in_specs.append(pl.BlockSpec((TB, tT, 1), lambda b, t: (b, t, 0)))
        kernel = _kernel_masked
    else:
        kernel = _kernel_unmasked

    grid = (B // TB, T_pad // tT)
    out = pl.pallas_call(
        kernel,
        out_shape=jax.ShapeDtypeStruct((B, 1, D), dtype),
        grid_spec=pltpu.PrefetchScalarGridSpec(
            num_scalar_prefetch=0,
            grid=grid,
            in_specs=in_specs,
            out_specs=pl.BlockSpec((TB, 1, D), lambda b, t: (b, 0, 0)),
            scratch_shapes=[
                pltpu.VMEM((TB, 1, 1), jnp.float32),   # running max m
                pltpu.VMEM((TB, 1, 1), jnp.float32),   # running denominator l
                pltpu.VMEM((TB, 1, D), jnp.float32),   # running weighted sum
            ],
        ),
        compiler_params=pltpu.CompilerParams(
            dimension_semantics=("parallel", "arbitrary"),
            vmem_limit_bytes=_VMEM_LIMIT_BYTES),
    )(*operands)
    return out.reshape(B, D)


def _reference(hidden_states, context_vector, mask=None):
    h32 = hidden_states.astype(jnp.float32)
    scores = jnp.einsum("btd,d->bt", h32, context_vector.astype(jnp.float32))
    if mask is not None:
        scores = jnp.where(mask == 0, -jnp.inf, scores)
    attn = jax.nn.softmax(scores, axis=-1)
    return jnp.einsum("bt,btd->bd", attn, h32).astype(hidden_states.dtype)


if __name__ == "__main__":
    B, T, D = 2, 8, 32
    key = jax.random.PRNGKey(0)
    k_h, k_c, k_m = jax.random.split(key, 3)

    hidden_states = jax.random.normal(k_h, (B, T, D), dtype=jnp.float32)
    # nn.Parameter(torch.randn(hidden_dim)) -> deterministic random init here
    context_vector = jax.random.normal(k_c, (D,), dtype=jnp.float32)
    # mask with some padding (keep at least one valid token per row)
    mask = (jax.random.uniform(k_m, (B, T)) > 0.3).astype(jnp.float32)
    mask = mask.at[:, 0].set(1.0)

    out = attention_pool(hidden_states, context_vector, mask)
    jax.block_until_ready(out)
    ref = _reference(hidden_states, context_vector, mask)
    assert out.shape == (B, D)
    assert jnp.allclose(out, ref, atol=1e-4, rtol=1e-4), (
        f"masked: max abs err = {jnp.max(jnp.abs(out - ref))}")

    # mask=None path (separate kernel variant without the bias input)
    out_nm = attention_pool(hidden_states, context_vector, None)
    jax.block_until_ready(out_nm)
    ref_nm = _reference(hidden_states, context_vector, None)
    assert jnp.allclose(out_nm, ref_nm, atol=1e-4, rtol=1e-4), (
        f"unmasked: max abs err = {jnp.max(jnp.abs(out_nm - ref_nm))}")

    print("KERNEL_OK")
</pallas_src>

<mosaic_0001>
module attributes {stable_mosaic.version = 11 : i64} {
  func.func @_kernel_masked(%arg0: i32, %arg1: i32, %arg2: memref<1x8x32xf32, #tpu.memory_space<vmem>>, %arg3: memref<1x1x32xf32, #tpu.memory_space<vmem>>, %arg4: memref<1x8x1xf32, #tpu.memory_space<vmem>>, %arg5: memref<1x1x32xf32, #tpu.memory_space<vmem>>, %arg6: memref<1x1x1xf32, #tpu.memory_space<vmem>>, %arg7: memref<1x1x1xf32, #tpu.memory_space<vmem>>, %arg8: memref<1x1x32xf32, #tpu.memory_space<vmem>>) attributes {dimension_semantics = [#tpu.dimension_semantics<parallel>, #tpu.dimension_semantics<arbitrary>], iteration_bounds = array<i64: 2, 1>, scalar_prefetch = 0 : i64, scratch_operands = 3 : i64, tpu.core_type = #tpu.core_type<tc>, window_params = [{transform_indices = @transform_0, window_bounds = array<i64: 1, 8, 32>}, {pipeline_mode = #tpu.pipeline_mode<synchronous>, transform_indices = @transform_1, window_bounds = array<i64: 1, 1, 32>}, {transform_indices = @transform_2, window_bounds = array<i64: 1, 8, 1>}, {transform_indices = @transform_3, window_bounds = array<i64: 1, 1, 32>}]} {
    %c0_i32 = arith.constant 0 : i32
    %0 = arith.cmpi eq, %arg1, %c0_i32 : i32
    %1 = arith.extui %0 : i1 to i32
    %c0_i32_0 = arith.constant 0 : i32
    %2 = arith.cmpi ne, %1, %c0_i32_0 : i32
    scf.if %2 {
      %cst_32 = arith.constant 0xFF800000 : f32
      %39 = vector.broadcast %cst_32 : f32 to vector<1x1x1xf32>
      %c0_33 = arith.constant 0 : index
      %c0_34 = arith.constant 0 : index
      %c0_35 = arith.constant 0 : index
      %40 = vector.load %arg6[%c0_33, %c0_34, %c0_35] : memref<1x1x1xf32, #tpu.memory_space<vmem>>, vector<1x1x1xf32>
      tpu.vector_store %arg6[%c0_33, %c0_34, %c0_35], %39 {strides = array<i32>} : memref<1x1x1xf32, #tpu.memory_space<vmem>>, vector<1x1x1xf32>,
      %cst_36 = arith.constant 0.000000e+00 : f32
      %41 = vector.broadcast %cst_36 : f32 to vector<1x1x1xf32>
      %c0_37 = arith.constant 0 : index
      %c0_38 = arith.constant 0 : index
      %c0_39 = arith.constant 0 : index
      %42 = vector.load %arg7[%c0_37, %c0_38, %c0_39] : memref<1x1x1xf32, #tpu.memory_space<vmem>>, vector<1x1x1xf32>
      tpu.vector_store %arg7[%c0_37, %c0_38, %c0_39], %41 {strides = array<i32>} : memref<1x1x1xf32, #tpu.memory_space<vmem>>, vector<1x1x1xf32>,
      %cst_40 = arith.constant 0.000000e+00 : f32
      %43 = vector.broadcast %cst_40 : f32 to vector<1x1x32xf32>
      %c0_41 = arith.constant 0 : index
      %c0_42 = arith.constant 0 : index
      %c0_43 = arith.constant 0 : index
      %44 = vector.load %arg8[%c0_41, %c0_42, %c0_43] : memref<1x1x32xf32, #tpu.memory_space<vmem>>, vector<1x1x32xf32>
      tpu.vector_store %arg8[%c0_41, %c0_42, %c0_43], %43 {strides = array<i32>} : memref<1x1x32xf32, #tpu.memory_space<vmem>>, vector<1x1x32xf32>,
    } else {
    }
    %c0 = arith.constant 0 : index
    %c0_1 = arith.constant 0 : index
    %c0_2 = arith.constant 0 : index
    %3 = vector.load %arg2[%c0, %c0_1, %c0_2] : memref<1x8x32xf32, #tpu.memory_space<vmem>>, vector<1x8x32xf32>
    %c0_3 = arith.constant 0 : index
    %c0_4 = arith.constant 0 : index
    %c0_5 = arith.constant 0 : index
    %4 = vector.load %arg3[%c0_3, %c0_4, %c0_5] : memref<1x1x32xf32, #tpu.memory_space<vmem>>, vector<1x1x32xf32>
    %5 = vector.broadcast %4 : vector<1x1x32xf32> to vector<1x8x32xf32>
    %6 = arith.mulf %3, %5 : vector<1x8x32xf32>
    %cst = arith.constant dense<0.000000e+00> : vector<1x8xf32>
    %7 = vector.multi_reduction <add>, %6, %cst [2] : vector<1x8x32xf32> to vector<1x8xf32>
    %8 = vector.shape_cast %7 : vector<1x8xf32> to vector<1x8x1xf32>
    %c0_6 = arith.constant 0 : index
    %c0_7 = arith.constant 0 : index
    %c0_8 = arith.constant 0 : index
    %9 = vector.load %arg4[%c0_6, %c0_7, %c0_8] : memref<1x8x1xf32, #tpu.memory_space<vmem>>, vector<1x8x1xf32>
    %10 = arith.addf %8, %9 : vector<1x8x1xf32>
    %c0_9 = arith.constant 0 : index
    %c0_10 = arith.constant 0 : index
    %c0_11 = arith.constant 0 : index
    %11 = vector.load %arg6[%c0_9, %c0_10, %c0_11] : memref<1x1x1xf32, #tpu.memory_space<vmem>>, vector<1x1x1xf32>
    %cst_12 = arith.constant dense<0xFF800000> : vector<1x1xf32>
    %12 = vector.multi_reduction <maximumf>, %10, %cst_12 [1] : vector<1x8x1xf32> to vector<1x1xf32>
    %13 = vector.shape_cast %12 : vector<1x1xf32> to vector<1x1x1xf32>
    %14 = arith.maximumf %11, %13 : vector<1x1x1xf32>
    %15 = arith.subf %11, %14 : vector<1x1x1xf32>
    %16 = math.exp %15 : vector<1x1x1xf32>
    %17 = vector.broadcast %14 : vector<1x1x1xf32> to vector<1x8x1xf32>
    %18 = arith.subf %10, %17 : vector<1x8x1xf32>
    %19 = math.exp %18 : vector<1x8x1xf32>
    %c0_13 = arith.constant 0 : index
    %c0_14 = arith.constant 0 : index
    %c0_15 = arith.constant 0 : index
    %20 = vector.load %arg7[%c0_13, %c0_14, %c0_15] : memref<1x1x1xf32, #tpu.memory_space<vmem>>, vector<1x1x1xf32>
    %21 = arith.mulf %16, %20 : vector<1x1x1xf32>
    %cst_16 = arith.constant dense<0.000000e+00> : vector<1x1xf32>
    %22 = vector.multi_reduction <add>, %19, %cst_16 [1] : vector<1x8x1xf32> to vector<1x1xf32>
    %23 = vector.shape_cast %22 : vector<1x1xf32> to vector<1x1x1xf32>
    %24 = arith.addf %21, %23 : vector<1x1x1xf32>
    %c0_17 = arith.constant 0 : index
    %c0_18 = arith.constant 0 : index
    %c0_19 = arith.constant 0 : index
    %25 = vector.load %arg7[%c0_17, %c0_18, %c0_19] : memref<1x1x1xf32, #tpu.memory_space<vmem>>, vector<1x1x1xf32>
    tpu.vector_store %arg7[%c0_17, %c0_18, %c0_19], %24 {strides = array<i32>} : memref<1x1x1xf32, #tpu.memory_space<vmem>>, vector<1x1x1xf32>,
    %c0_20 = arith.constant 0 : index
    %c0_21 = arith.constant 0 : index
    %c0_22 = arith.constant 0 : index
    %26 = vector.load %arg8[%c0_20, %c0_21, %c0_22] : memref<1x1x32xf32, #tpu.memory_space<vmem>>, vector<1x1x32xf32>
    %27 = vector.broadcast %16 : vector<1x1x1xf32> to vector<1x1x32xf32>
    %28 = arith.mulf %27, %26 : vector<1x1x32xf32>
    %29 = vector.broadcast %19 : vector<1x8x1xf32> to vector<1x8x32xf32>
    %30 = arith.mulf %29, %3 : vector<1x8x32xf32>
    %cst_23 = arith.constant dense<0.000000e+00> : vector<1x32xf32>
    %31 = vector.multi_reduction <add>, %30, %cst_23 [1] : vector<1x8x32xf32> to vector<1x32xf32>
    %32 = vector.shape_cast %31 : vector<1x32xf32> to vector<1x1x32xf32>
    %33 = arith.addf %28, %32 : vector<1x1x32xf32>
    %c0_24 = arith.constant 0 : index
    %c0_25 = arith.constant 0 : index
    %c0_26 = arith.constant 0 : index
    %34 = vector.load %arg8[%c0_24, %c0_25, %c0_26] : memref<1x1x32xf32, #tpu.memory_space<vmem>>, vector<1x1x32xf32>
    tpu.vector_store %arg8[%c0_24, %c0_25, %c0_26], %33 {strides = array<i32>} : memref<1x1x32xf32, #tpu.memory_space<vmem>>, vector<1x1x32xf32>,
    %c0_27 = arith.constant 0 : index
    %c0_28 = arith.constant 0 : index
    %c0_29 = arith.constant 0 : index
    %35 = vector.load %arg6[%c0_27, %c0_28, %c0_29] : memref<1x1x1xf32, #tpu.memory_space<vmem>>, vector<1x1x1xf32>
    tpu.vector_store %arg6[%c0_27, %c0_28, %c0_29], %14 {strides = array<i32>} : memref<1x1x1xf32, #tpu.memory_space<vmem>>, vector<1x1x1xf32>,
    %c0_i32_30 = arith.constant 0 : i32
    %36 = arith.cmpi eq, %arg1, %c0_i32_30 : i32
    %37 = arith.extui %36 : i1 to i32
    %c0_i32_31 = arith.constant 0 : i32
    %38 = arith.cmpi ne, %37, %c0_i32_31 : i32
    scf.if %38 {
      %c0_32 = arith.constant 0 : index
      %c0_33 = arith.constant 0 : index
      %c0_34 = arith.constant 0 : index
      %39 = vector.load %arg7[%c0_32, %c0_33, %c0_34] : memref<1x1x1xf32, #tpu.memory_space<vmem>>, vector<1x1x1xf32>
      %40 = tpu.reciprocal %39 {approx = true} : vector<1x1x1xf32> -> vector<1x1x1xf32>
      %41 = arith.mulf %39, %40 : vector<1x1x1xf32>
      %cst_35 = arith.constant 2.000000e+00 : f32
      %42 = vector.broadcast %cst_35 : f32 to vector<1x1x1xf32>
      %43 = arith.subf %42, %41 : vector<1x1x1xf32>
      %44 = arith.mulf %40, %43 : vector<1x1x1xf32>
      %c0_36 = arith.constant 0 : index
      %c0_37 = arith.constant 0 : index
      %c0_38 = arith.constant 0 : index
      %45 = vector.load %arg8[%c0_36, %c0_37, %c0_38] : memref<1x1x32xf32, #tpu.memory_space<vmem>>, vector<1x1x32xf32>
      %46 = vector.broadcast %44 : vector<1x1x1xf32> to vector<1x1x32xf32>
      %47 = arith.mulf %45, %46 : vector<1x1x32xf32>
      %c0_39 = arith.constant 0 : index
      %c0_40 = arith.constant 0 : index
      %c0_41 = arith.constant 0 : index
      %48 = vector.load %arg5[%c0_39, %c0_40, %c0_41] : memref<1x1x32xf32, #tpu.memory_space<vmem>>, vector<1x1x32xf32>
      tpu.vector_store %arg5[%c0_39, %c0_40, %c0_41], %47 {strides = array<i32>} : memref<1x1x32xf32, #tpu.memory_space<vmem>>, vector<1x1x32xf32>,
    } else {
    }
    return
  }
  func.func @transform_0(%arg0: i32, %arg1: i32) -> (i32, i32, i32) {
    %c0_i32 = arith.constant 0 : i32
    %c0_i32_0 = arith.constant 0 : i32
    return %arg0, %arg1, %c0_i32 : i32, i32, i32
  }
  func.func @transform_1(%arg0: i32, %arg1: i32) -> (i32, i32, i32) {
    %c0_i32 = arith.constant 0 : i32
    %c0_i32_0 = arith.constant 0 : i32
    %c0_i32_1 = arith.constant 0 : i32
    %c0_i32_2 = arith.constant 0 : i32
    return %c0_i32, %c0_i32_0, %c0_i32_1 : i32, i32, i32
  }
  func.func @transform_2(%arg0: i32, %arg1: i32) -> (i32, i32, i32) {
    %c0_i32 = arith.constant 0 : i32
    %c0_i32_0 = arith.constant 0 : i32
    return %arg0, %arg1, %c0_i32 : i32, i32, i32
  }
  func.func @transform_3(%arg0: i32, %arg1: i32) -> (i32, i32, i32) {
    %c0_i32 = arith.constant 0 : i32
    %c0_i32_0 = arith.constant 0 : i32
    %c0_i32_1 = arith.constant 0 : i32
    return %arg0, %c0_i32, %c0_i32_0 : i32, i32, i32
  }
}

</mosaic_0001>

<bundles_post_ra>
// kernel: tpu_custom_call.1
= control target key start
LH: loop header
LB: loop body
LE: loop exit
PB: predicated region body
PF: predicated region fallthrough
CT: control target
= control target key end

     0   :  { %8 = vsyncpa [#allocation6], 0  ;;  %s711_s0 = inlined_call_operand.vmem [shape: f32[2,8,32], index: 0, kind: input, shape index: {}]   ;;  %s712_s1 = inlined_call_operand.vmem [shape: f32[1,1,32], index: 1, kind: input, shape index: {}]   ;;  %s713_s2 = inlined_call_operand.vmem [shape: f32[2,8,1], index: 2, kind: input, shape index: {}]   ;;  %s714_s3 = inlined_call_operand.hbm [shape: f32[2,1,32], index: 3, kind: output, shape index: {}]  }
   0x1   :  { %10 = vsyncpa [#allocation6 + $0x1], 0  ;;  %s595_s12 = smov 0   ;;  %s597_s13 = smov 0  }
   0x2   :  { %s599_s14 = smov 0   ;;  %s601_s15 = smov 0  }
   0x3   :  { %s603_s16 = smov 0   ;;  %s605_s17 = smov 0  }
   0x4 LB: > { %s416_s18 = sadd.s32 4294967295, %s569_s17   ;;  %s417_s19 = sadd.s32 4294967294, %s569_s17   ;;  %s569_s17 = sphi %s605_s17, %s16_s17   ;;  %s565_s16 = sphi %s603_s16, %s721_s16   ;;  %s561_s15 = sphi %s601_s15, %s720_s15   ;;  %s557_s14 = sphi %s599_s14, %s719_s14   ;;  %s553_s13 = sphi %s597_s13, %s718_s13   ;;  %s549_s12 = sphi %s595_s12, %s717_s12  }
   0x5   : > { %s28_s20 = sadd.s32 1, %s565_s16  ;;  %s112_s21 = sadd.s32 1, %s557_s14 }
   0x6   : > { %p30_p0 = scmp.ge.s32.totalorder %s28_s20, 2  ;;  %p122_p1 = scmp.ne.s32.totalorder %s557_s14, %s553_s13 }
   0x7   : > { %p123_p2 = scmp.eq.s32.totalorder %s416_s18, 1  ;;  %p128_p3 = scmp.ne.s32.totalorder %s553_s13, %s549_s12 }
   0x8   : > { %s723_s20 = smov (%p30_p0, %s28_s20), 0  ;;  %p129_p5 = scmp.eq.s32.totalorder %s417_s19, 1 }
   0x9   : > { %p635_p4 = por %p123_p2, %p122_p1  ;;  %s109_s23 = ssub.s32 %s565_s16, %s723_s20 }
   0xa   : > { %p420_p6 = scmp.ge.s32.totalorder %s569_s17, 1  ;;  %p110_p7 = scmp.eq.s32.totalorder %s109_s23, 0 }
   0xb   : > { %p642_p8 = por %p129_p5, %p128_p3  ;;  %p170_p9 = scmp.lt.s32.totalorder %s569_s17, 3 }
   0xc   : > { %s648_s25 = scalar_select %p110_p7, %s557_s14, %s112_s21  }
   0xd   : > { %p171_p10 = pnand %p420_p6, %p170_p9 }
   0xe   : > { %p202_p11 = scmp.lt.s32.totalorder (!%p171_p10), %s561_s15, 1  ;;  %s200_s9 = sand.u32 (!%p171_p10), 1, %s553_s13  }
   0xf   : > { %174 = sbr.rel (%p171_p10) target bundleno = 387 (0x183), region = 32  ;;  %s424_s10 = sshll.u32 (!%p171_p10), %s561_s15, 4 }
  0x10   : > { %s201_s11 = scalar_lea.vmem (!%p171_p10), [#allocation5], %s200_s9  ;;  %s333_s23 = scalar_lea.hbm (!%p171_p10), %s714_s3, %s424_s10 }
  0x11   : > { %s335_s18 = sshll.u32 (!%p171_p10), %s201_s11, 4  ;;  %s574_s28 = smov (!%p171_p10), [#allocation5]   ;;  %s336_s18 = int_to_ptr.vmem [resolvable:$true] %s335_s18 }
  0x14   : > { %vm220_vm0 = vcmask 0   ;;  %v571_v0 = vmov -inf   ;;  %s203_s26 = scalar_select %p202_p11, %s561_s15, 1  ;;  %v572_v1 = vmov 0.0   ;;  %v423_v2 = vld [vmem:[%s712_s1] ss:$0 sm:$0xff]  ;;  %v254_v12 = vlaneseq }
  0x15   : > { %221 = vst.msk [vmem:[#allocation2] sm:$0x1] %vm220_vm0, %v571_v0  ;;  %222 = vst.msk [vmem:[#allocation3] sm:$0x1] %vm220_vm0, %v572_v1  ;;  %vm234_vm1 = vcmask 261120   ;;  %v573_v6 = vmov 0  }
  0x16   : > { %s421_s27 = sshll.u32 %s203_s26, 3  ;;  %486 = vset.pattern.permute.xlu1 %v573_v6  ;;  %485 = vset.pattern.permute.xlu0 %v573_v6  ;;  %vm223_vm2 = vcmask 253952   ;;  %vm241_vm3 = vcmask 7168   ;;  %v255_v15 = vshrl.u32 %v254_v12, 7  ;;  %s323_s26 = scalar_lea.sflag [#allocation6], %s200_s9 }
  0x17   : > { %s208_s5 = scalar_lea.vmem %s711_s0, %s421_s27  ;;  %224 = vst.msk [vmem:[#allocation4] sm:$0x1] %vm223_vm2, %v572_v1  ;;  %s215_s8 = scalar_lea.vmem %s713_s2, %s421_s27 }
  0x18   : > { %v225_v3 = vld [vmem:[%s208_s5] sm:$0xff]  ;;  %v256_v19 = vsub.s32 0, %v255_v15  ;;  %s493_s27 = scalar_lea.vmem %s336_s18, 16  ;;  %s497_s15 = sshll.u32 %s574_s28, 4  ;;  %s498_s15 = int_to_ptr.vmem [resolvable:$false] %s497_s15 }
  0x19   : > { %v233_v4 = vmul.f32 %v423_v2, %v225_v3  ;;  %v238_v7 = vld [vmem:[%s215_s8] sm:$0xff]  ;;  %p494_p12 = scmp.ne.s32.totalorder %s336_s18, %s493_s27  ;;  %s499_s29 = scalar_lea.vmem %s498_s15, 32 }
  0x1a   : > { %p500_p1 = scmp.lt.s32.totalorder %s336_s18, %s498_s15  ;;  %p501_p2 = scmp.lt.s32.totalorder %s499_s29, %s493_s27 }
  0x1b   : > { %v235_v5 = vsel %vm234_vm1, %v233_v4, 0.0  ;;  %p495_p13 = pnand %p494_p12, %p635_p4 }
  0x1c   : > { %236 = vadd.xlane.f32.xlu0 %v235_v5  ;;  %v240_v18 = vld [vmem:[#allocation2] sm:$0x1]  ;;  %v262_v34 = vld [vmem:[#allocation3] sm:$0x1]  ;;  %p502_p3 = por %p501_p2, %p500_p1 }
  0x1d   : > { %p496_p0 = pneg %p495_p13 }
  0x1e   : > { %v274_v53 = vld [vmem:[#allocation4] sm:$0x1] }
  0x1f   : > { %p503_p5 = pnand %p502_p3, %p496_p0 }
  0xa5   : > { %v237_v8 = vpop.xlane.xlu0 %236 }
  0xa6   : > { %v239_v9 = vadd.f32 %v238_v7, %v237_v8 }
  0xa8   : > { %v242_v10 = vsel %vm241_vm3, %v239_v9, -inf }
  0xa9   : > { %v243_v11 = vrot.slane %v242_v10, 4 }
  0xab   : > { %v244_v13 = vmax.f32 %v242_v10, %v243_v11 }
  0xad   : > { %v245_v14 = vrot.slane %v244_v13, 2 }
  0xaf   : > { %v246_v16 = vmax.f32 %v244_v13, %v245_v14 }
  0xb1   : > { %v247_v17 = vrot.slane %v246_v16, 1 }
  0xb3   : > { %v248_v20 = vmax.f32 %v246_v16, %v247_v17 }
  0xb5   : > { %v249_v21 = vmax.f32 %v240_v18, %v248_v20 }
  0xb7   : > { %v250_v22 = vsub.f32 %v240_v18, %v249_v21  ;;  %v257_v23 = vrot.slane %v249_v21, %v256_v19  ;;  %301 = vst.msk [vmem:[#allocation2] sm:$0x1] %vm220_vm0, %v249_v21 }
  0xb9   : > { %v251_v24 = vmul.f32 1.442695, %v250_v22  ;;  %v259_v25 = vsub.f32 %v239_v9, %v257_v23 }
  0xbb   : > { %487 = vpow2.f32 %v251_v24  ;;  %v260_v26 = vmul.f32 1.442695, %v259_v25 }
  0xbd   : > { %489 = vpow2.f32 %v260_v26 }
  0xc8   : > { %v488_v27 = vpop.eup %487 }
  0xc9   : > { %277 = vperm.xlu1 %486, %v488_v27   ;;  %v263_v36 = vmul.f32 %v488_v27, %v262_v34 }
  0xca   : > { %v490_v28 = vpop.eup %489 }
  0xcb   : > { %v264_v29 = vsel %vm241_vm3, %v490_v28, 0.0  ;;  %287 = vperm.xlu0 %485, %v490_v28  }
  0xcc   : > { %v265_v30 = vrot.slane %v264_v29, 4 }
  0xce   : > { %v266_v31 = vadd.f32 %v265_v30, %v264_v29 }
  0xd0   : > { %v267_v32 = vrot.slane %v266_v31, 2 }
  0xd2   : > { %v268_v33 = vadd.f32 %v267_v32, %v266_v31 }
  0xd4   : > { %v269_v35 = vrot.slane %v268_v33, 1 }
  0xd6   : > { %v270_v37 = vadd.f32 %v269_v35, %v268_v33 }
  0xd8   : > { %v271_v38 = vadd.f32 %v270_v37, %v263_v36 }
  0xda   : > { %273 = vst.msk [vmem:[#allocation3] sm:$0x1] %vm220_vm0, %v271_v38 }
  0xe1   : > { %v305_v39 = vld [vmem:[#allocation3] sm:$0x1] }
  0xe2   : > { %491 = vrcp.f32 %v305_v39 }
  0xef   : > { %v492_v40 = vpop.eup %491 }
  0xf0   : > { %v307_v41 = vmul.f32 %v492_v40, %v305_v39 }
  0xf2   : > { %v308_v42 = vsub.f32 2.0, %v307_v41 }
  0xf4   : > { %v309_v43 = vmul.f32 %v492_v40, %v308_v42 }
  0xf6   : > { %313 = vperm.xlu1 %486, %v309_v43  }
 0x144   : > { %v278_v49 = vpop.permute.xlu1 %277 }
 0x145   : > { %v283_v51 = vrot.slane %v278_v49, %v256_v19 }
 0x146   : > { %v288_v44 = vpop.permute.xlu0 %287 }
 0x147   : > { %v290_v45 = vmul.f32 %v288_v44, %v225_v3  ;;  %v284_v55 = vmul.f32 %v283_v51, %v274_v53 }
 0x149   : > { %v291_v46 = vsel %vm234_vm1, %v290_v45, 0.0 }
 0x14a   : > { %v292_v47 = vrot.slane %v291_v46, 4 }
 0x14c   : > { %v293_v48 = vadd.f32 %v292_v47, %v291_v46 }
 0x14e   : > { %v294_v50 = vrot.slane %v293_v48, 2 }
 0x150   : > { %v295_v52 = vadd.f32 %v294_v50, %v293_v48 }
 0x152   : > { %v296_v54 = vrot.slane %v295_v52, 1 }
 0x154   : > { %v297_v56 = vadd.f32 %v296_v54, %v295_v52 }
 0x156   : > { %v298_v57 = vadd.f32 %v297_v56, %v284_v55 }
 0x158   : > { %300 = vst.msk [vmem:[#allocation4] sm:$0x1] %vm223_vm2, %v298_v57 }
 0x15f   : > { %v310_v60 = vld [vmem:[#allocation4] sm:$0x1] }
 0x171   : > { %v314_v58 = vpop.permute.xlu1 %313 }
 0x172   : > { %v319_v59 = vrot.slane %v314_v58, %v256_v19 }
 0x174   : > { %v320_v61 = vmul.f32 %v319_v59, %v310_v60 }
 0x176   : > { %321 = vst.msk [vmem:[%s201_s11] sm:$0x1] %vm223_vm2, %v320_v61 }
 0x177   : > { %506 = shalt.err (!%p503_p5)
}
 0x178   : > { %s507_s30 = scalar_lea.hbm %s333_s23, 16  ;;  %s511_s6 = scalar_lea.hbm %s714_s3, 32 }
 0x179   : > { %p508_p6 = scmp.ne.s32.totalorder %s333_s23, %s507_s30  ;;  %p512_p10 = scmp.lt.s32.totalorder %s333_s23, %s714_s3 }
 0x17a   : > { %p513_p11 = scmp.lt.s32.totalorder %s511_s6, %s507_s30 }
 0x17b   : > { %p509_p7 = pnand %p508_p6, %p635_p4 }
 0x17c   : > { %p514_p12 = por %p513_p11, %p512_p10 }
 0x17d   : > { %p510_p9 = pneg %p509_p7 }
 0x17f   : > { %p515_p13 = pnand %p514_p12, %p510_p9 }
 0x181   : > { %518 = shalt.err (!%p515_p13)
}
 0x182   : > { %427 = dma.vmem_to_hbm [thread:$0]  (%p635_p4), %s336_s18, 16, %s333_s23, %s323_s26  }
 0x183 PF: > { %p433_p0 = scmp.ge.s32.totalorder %s569_s17, 2  ;;  %s347_s9 = sand.u32 1, %s549_s12  }
 0x184   : > { %s348_s10 = scalar_lea.sflag [#allocation6], %s347_s9 }
 0x185   : > { %p430_p1 = pnand %p433_p0, %p642_p8 }
 0x187   : > { %p431_p2 = pneg %p430_p1 }
 0x189   : > { %544 = dma.done.wait (%p431_p2), %s348_s10, 16  }
 0x18a   : > { %546 = vsyncadd (%p431_p2), %s348_s10, 4294967280  ;;  %s16_s17 = sadd.s32 1, %s569_s17   ;;  %s717_s12 = smov %s553_s13 }
 0x18b   : > { %p13_p3 = scmp.ge.s32.totalorder %s16_s17, 4   ;;  %s718_s13 = smov %s557_s14 }
 0x18c   : > { %s719_s14 = smov %s648_s25  ;;  %s720_s15 = smov %s565_s16 }
 0x18d   : > { %s721_s16 = smov %s723_s20  ;;  %15 = sbr.rel (!%p13_p3) target bundleno = 4 (0x4), region = 78 }
 0x192   :  { %352 = vsyncpa [#allocation6], 1 }
 0x193   :  { %354 = vsyncpa [#allocation6 + $0x1], 1 }

</bundles_post_ra>
